<compile_context>
chip_gen: v7x
topology: tpu7x:2x2x1
jax: 0.10.0
libtpu: 0.0.40
codegen_flags: <defaults>
</compile_context>

<pallas_src>
import functools

import jax
import jax.numpy as jnp
import numpy as np
from jax.experimental import pallas as pl
from jax.experimental.pallas import tpu as pltpu

NEG_SLOPE = 0.01       # nn.LeakyReLU() default
BN_EPS = 1e-5          # nn.BatchNorm2d default
MATMUL_DTYPE = jnp.float32   # jnp.bfloat16 recommended on v6e/v7x (f32 acc kept)


def _leaky(x):
    return jnp.where(x > 0, x, NEG_SLOPE * x)


def repeat_block_kernel(mask_ref, x_ref, s1_ref, b1_ref, w1_ref,
                        s2_ref, b2_ref, w2_ref, cb2_ref,
                        o_ref, apad_ref, stk_ref,
                        *, c, cp, nb, taps, matmul_dtype):
    """One grid step processes `nb` batch elements.

    mask_ref : VMEM (8, HW)      per-tap boundary masks (grid-invariant)
    x_ref    : VMEM (nb, C, HW)  input, channels on sublanes, H*W on lanes
    s*/b*    : VMEM (C,1)/(Cp,1) folded BatchNorm scale/bias (conv1 bias in b2)
    w*       : VMEM (Cp, 9*Cp)   2-D lane-dense conv weights (col = tap*Cp+cin)
    cb2      : VMEM (C, 1)       conv2 bias
    o_ref    : VMEM (nb, C, HW)  output, x.dtype
    apad_ref : VMEM (Cp, HW)     channel-padded activation scratch
    stk_ref  : VMEM (9*Cp, HW)   stacked-tap slab (matmul RHS)
    """
    masks = mask_ref[...]                               # (8, HW) f32

    # Rows c..cp-1 of the activation-pad scratch must be zero; nothing below
    # ever writes them, so a single zero-fill per grid step suffices.
    apad_ref[...] = jnp.zeros_like(apad_ref)

    s1 = s1_ref[...]
    b1 = b1_ref[...]
    s2 = s2_ref[...]
    b2 = b2_ref[...]
    cb2 = cb2_ref[...]
    w1 = w1_ref[...].astype(matmul_dtype)               # (Cp, 9*Cp)
    w2 = w2_ref[...].astype(matmul_dtype)

    def stack_taps(act):
        # act: (Cp, HW), padded rows are zero -> slab padded rows stay zero.
        for t, (shift, mi) in enumerate(taps):
            if shift is None:                            # center tap
                chunk = act
            else:
                chunk = pltpu.roll(act, shift, axis=1) * masks[mi:mi + 1, :]
            stk_ref[pl.ds(t * cp, cp), :] = chunk

    def conv(wmat):
        # single MXU matmul per conv: (Cp, 9*Cp) @ (9*Cp, HW) -> (Cp, HW)
        return jnp.dot(wmat, stk_ref[...].astype(matmul_dtype),
                       preferred_element_type=jnp.float32)

    for b in range(nb):
        x = x_ref[b].astype(jnp.float32)                 # (C, HW)

        # BN1 (folded affine) + LeakyReLU, then conv1 (stacked taps).
        a1 = _leaky(x * s1 + b1)                         # (C, HW)
        apad_ref[pl.ds(0, c), :] = a1                    # rows c..cp-1 stay 0
        stack_taps(apad_ref[...])
        y1 = conv(w1)                                    # (Cp, HW), pad rows 0

        # conv1 bias folded into b2 host-side; BN2 + LeakyReLU, then conv2.
        a2 = _leaky(y1 * s2 + b2)                        # pad rows stay 0
        stack_taps(a2)
        y2 = conv(w2)

        # Dropout2d is identity at inference; residual fused into the store.
        # TODO(synk): train-mode BatchNorm batch statistics and stochastic
        # Dropout2d channel masking are not implemented (eval-mode only).
        o_ref[b] = (y2[:c, :] + cb2 + x).astype(o_ref.dtype)


def _fold_bn(gamma, beta, mean, var):
    scale = gamma.astype(jnp.float32) / jnp.sqrt(var.astype(jnp.float32) + BN_EPS)
    bias = beta.astype(jnp.float32) - mean.astype(jnp.float32) * scale
    return scale, bias


def _build_taps(h, w):
    """Static (shift, mask-row) per tap + stacked boundary masks (numpy)."""
    hw = h * w
    pos = np.arange(hw)
    row, col = pos // w, pos % w
    taps, mask_rows = [], []
    for kh in range(3):
        for kw in range(3):
            oh, ow = kh - 1, kw - 1
            if oh == 0 and ow == 0:
                taps.append((None, None))                # center: no shift/mask
                continue
            shift = (-(oh * w + ow)) % hw                # gather act[p + oh*w + ow]
            valid = ((row + oh >= 0) & (row + oh < h)
                     & (col + ow >= 0) & (col + ow < w))
            taps.append((shift, len(mask_rows)))
            mask_rows.append(valid.astype(np.float32))
    return tuple(taps), np.stack(mask_rows)              # taps, (8, HW)


def _fold_batch(n):
    """Elements per grid step: fold batch to amortize per-step overhead while
    keeping >= 2 grid steps so both v7x TensorCores stay busy."""
    if n < 2:
        return 1
    best = 1
    for nb in range(1, min(n, 8) + 1):
        if n % nb == 0 and n // nb >= 2:
            best = nb
    return best


@jax.jit
def repeat_block_pallas(x, g1, be1, m1, v1, w1, cb1, g2, be2, m2, v2, w2, cb2):
    N, C, H, W = x.shape
    HW = H * W
    Cp = max(8, ((C + 7) // 8) * 8)                      # sublane-aligned channels
    KP = 9 * Cp                                          # stacked contraction dim

    taps, masks_np = _build_taps(H, W)
    masks = jnp.asarray(masks_np)                        # (8, HW) f32

    s1, b1 = _fold_bn(g1, be1, m1, v1)
    s2, b2 = _fold_bn(g2, be2, m2, v2)
    b2 = b2 + cb1.astype(jnp.float32) * s2               # fold conv1 bias into BN2

    def vec(v):                                          # (C,) -> (C, 1)
        return v.astype(jnp.float32).reshape(C, 1)

    def vec_p(v):                                        # (C,) -> (Cp, 1), zero pad
        return jnp.pad(v.astype(jnp.float32), (0, Cp - C)).reshape(Cp, 1)

    def pack_w(wt):                                      # (C,C,3,3) -> (Cp, 9*Cp)
        t = jnp.transpose(wt.astype(jnp.float32), (0, 2, 3, 1)).reshape(C, 9, C)
        t = jnp.pad(t, ((0, Cp - C), (0, 0), (0, Cp - C)))   # (Cp, 9, Cp)
        return t.reshape(Cp, KP)

    xr = x.reshape(N, C, HW)                             # contiguous -> free

    Nb = _fold_batch(N)
    G = N // Nb

    kernel = pl.pallas_call(
        functools.partial(repeat_block_kernel, c=C, cp=Cp, nb=Nb, taps=taps,
                          matmul_dtype=MATMUL_DTYPE),
        out_shape=jax.ShapeDtypeStruct((N, C, HW), x.dtype),
        grid_spec=pltpu.PrefetchScalarGridSpec(
            num_scalar_prefetch=0,
            grid=(G,),
            in_specs=[
                pl.BlockSpec((8, HW), lambda g: (0, 0)),           # masks
                pl.BlockSpec((Nb, C, HW), lambda g: (g, 0, 0)),    # x
                pl.BlockSpec((C, 1), lambda g: (0, 0)),            # s1
                pl.BlockSpec((C, 1), lambda g: (0, 0)),            # b1
                pl.BlockSpec((Cp, KP), lambda g: (0, 0)),          # w1 (2-D)
                pl.BlockSpec((Cp, 1), lambda g: (0, 0)),           # s2
                pl.BlockSpec((Cp, 1), lambda g: (0, 0)),           # b2
                pl.BlockSpec((Cp, KP), lambda g: (0, 0)),          # w2 (2-D)
                pl.BlockSpec((C, 1), lambda g: (0, 0)),            # conv2 bias
            ],
            out_specs=pl.BlockSpec((Nb, C, HW), lambda g: (g, 0, 0)),
            scratch_shapes=[
                pltpu.VMEM((Cp, HW), jnp.float32),                 # apad
                pltpu.VMEM((KP, HW), jnp.float32),                 # stacked taps
            ],
        ),
        compiler_params=pltpu.CompilerParams(
            dimension_semantics=("parallel",),
            vmem_limit_bytes=16 * 1024 * 1024),
    )
    out = kernel(masks, xr, vec(s1), vec(b1), pack_w(w1),
                 vec_p(s2), vec_p(b2), pack_w(w2), vec(cb2))
    return out.reshape(N, C, H, W)


def repeat_block_ref(x, g1, be1, m1, v1, w1, cb1, g2, be2, m2, v2, w2, cb2):
    """Pure-JAX reference (eval-mode PyTorch semantics)."""
    def bn(t, g, b, m, v):
        inv = g / jnp.sqrt(v + BN_EPS)
        return (t - m[None, :, None, None]) * inv[None, :, None, None] \
            + b[None, :, None, None]

    def conv(t, w, b):
        y = jax.lax.conv_general_dilated(
            t, w, window_strides=(1, 1), padding=((1, 1), (1, 1)),
            dimension_numbers=('NCHW', 'OIHW', 'NCHW'),
            precision=jax.lax.Precision.HIGHEST)
        return y + b[None, :, None, None]

    t = _leaky(bn(x, g1, be1, m1, v1))
    t = conv(t, w1, cb1)
    t = _leaky(bn(t, g2, be2, m2, v2))
    t = conv(t, w2, cb2)
    return t + x  # Dropout2d is identity in eval mode


if __name__ == "__main__":
    N, C, H, W = 2, 4, 16, 16
    key = jax.random.PRNGKey(0)
    ks = jax.random.split(key, 12)

    x = jax.random.normal(ks[0], (N, C, H, W), jnp.float32)

    # Deterministic synthetic parameters (shapes per RepeatBlock.__init__).
    g1 = 1.0 + 0.1 * jax.random.normal(ks[1], (C,), jnp.float32)
    be1 = 0.1 * jax.random.normal(ks[2], (C,), jnp.float32)
    m1 = 0.1 * jax.random.normal(ks[3], (C,), jnp.float32)
    v1 = 0.5 + jax.random.uniform(ks[4], (C,), jnp.float32)
    w1 = 0.2 * jax.random.normal(ks[5], (C, C, 3, 3), jnp.float32)
    cb1 = 0.05 * jax.random.normal(ks[6], (C,), jnp.float32)

    g2 = 1.0 + 0.1 * jax.random.normal(ks[7], (C,), jnp.float32)
    be2 = 0.1 * jax.random.normal(ks[8], (C,), jnp.float32)
    m2 = 0.1 * jax.random.normal(ks[9], (C,), jnp.float32)
    v2 = 0.5 + jax.random.uniform(ks[10], (C,), jnp.float32)
    w2 = 0.2 * jax.random.normal(ks[11], (C, C, 3, 3), jnp.float32)
    cb2 = 0.05 * jax.random.normal(ks[0], (C,), jnp.float32)

    args = (x, g1, be1, m1, v1, w1, cb1, g2, be2, m2, v2, w2, cb2)

    out = jax.block_until_ready(repeat_block_pallas(*args))
    ref = jax.block_until_ready(repeat_block_ref(*args))

    # Tolerance accounts for MXU default-precision f32 matmuls vs HIGHEST-precision
    # XLA reference; structural errors would be O(1) and still caught.
    np.testing.assert_allclose(np.asarray(out), np.asarray(ref),
                               rtol=2e-2, atol=2e-2)
    print("KERNEL_OK")
</pallas_src>

<mosaic_0001>
module attributes {stable_mosaic.version = 11 : i64} {
  func.func @repeat_block_kernel(%arg0: i32, %arg1: memref<8x256xf32, #tpu.memory_space<vmem>>, %arg2: memref<1x4x256xf32, #tpu.memory_space<vmem>>, %arg3: memref<4x1xf32, #tpu.memory_space<vmem>>, %arg4: memref<4x1xf32, #tpu.memory_space<vmem>>, %arg5: memref<8x72xf32, #tpu.memory_space<vmem>>, %arg6: memref<8x1xf32, #tpu.memory_space<vmem>>, %arg7: memref<8x1xf32, #tpu.memory_space<vmem>>, %arg8: memref<8x72xf32, #tpu.memory_space<vmem>>, %arg9: memref<4x1xf32, #tpu.memory_space<vmem>>, %arg10: memref<1x4x256xf32, #tpu.memory_space<vmem>>, %arg11: memref<8x256xf32, #tpu.memory_space<vmem>>, %arg12: memref<72x256xf32, #tpu.memory_space<vmem>>) attributes {dimension_semantics = [#tpu.dimension_semantics<parallel>], iteration_bounds = array<i64: 2>, scalar_prefetch = 0 : i64, scratch_operands = 2 : i64, tpu.core_type = #tpu.core_type<tc>, window_params = [{pipeline_mode = #tpu.pipeline_mode<synchronous>, transform_indices = @transform_0, window_bounds = array<i64: 8, 256>}, {transform_indices = @transform_1, window_bounds = array<i64: 1, 4, 256>}, {pipeline_mode = #tpu.pipeline_mode<synchronous>, transform_indices = @transform_2, window_bounds = array<i64: 4, 1>}, {pipeline_mode = #tpu.pipeline_mode<synchronous>, transform_indices = @transform_3, window_bounds = array<i64: 4, 1>}, {pipeline_mode = #tpu.pipeline_mode<synchronous>, transform_indices = @transform_4, window_bounds = array<i64: 8, 72>}, {pipeline_mode = #tpu.pipeline_mode<synchronous>, transform_indices = @transform_5, window_bounds = array<i64: 8, 1>}, {pipeline_mode = #tpu.pipeline_mode<synchronous>, transform_indices = @transform_6, window_bounds = array<i64: 8, 1>}, {pipeline_mode = #tpu.pipeline_mode<synchronous>, transform_indices = @transform_7, window_bounds = array<i64: 8, 72>}, {pipeline_mode = #tpu.pipeline_mode<synchronous>, transform_indices = @transform_8, window_bounds = array<i64: 4, 1>}, {transform_indices = @transform_9, window_bounds = array<i64: 1, 4, 256>}]} {
    %c0 = arith.constant 0 : index
    %c0_0 = arith.constant 0 : index
    %0 = vector.load %arg1[%c0, %c0_0] : memref<8x256xf32, #tpu.memory_space<vmem>>, vector<8x256xf32>
    %cst = arith.constant 0.000000e+00 : f32
    %1 = vector.broadcast %cst : f32 to vector<8x256xf32>
    %c0_1 = arith.constant 0 : index
    %c0_2 = arith.constant 0 : index
    %2 = vector.load %arg11[%c0_1, %c0_2] : memref<8x256xf32, #tpu.memory_space<vmem>>, vector<8x256xf32>
    tpu.vector_store %arg11[%c0_1, %c0_2], %1 {strides = array<i32>} : memref<8x256xf32, #tpu.memory_space<vmem>>, vector<8x256xf32>,
    %c0_3 = arith.constant 0 : index
    %c0_4 = arith.constant 0 : index
    %3 = vector.load %arg3[%c0_3, %c0_4] : memref<4x1xf32, #tpu.memory_space<vmem>>, vector<4x1xf32>
    %c0_5 = arith.constant 0 : index
    %c0_6 = arith.constant 0 : index
    %4 = vector.load %arg4[%c0_5, %c0_6] : memref<4x1xf32, #tpu.memory_space<vmem>>, vector<4x1xf32>
    %c0_7 = arith.constant 0 : index
    %c0_8 = arith.constant 0 : index
    %5 = vector.load %arg6[%c0_7, %c0_8] : memref<8x1xf32, #tpu.memory_space<vmem>>, vector<8x1xf32>
    %c0_9 = arith.constant 0 : index
    %c0_10 = arith.constant 0 : index
    %6 = vector.load %arg7[%c0_9, %c0_10] : memref<8x1xf32, #tpu.memory_space<vmem>>, vector<8x1xf32>
    %c0_11 = arith.constant 0 : index
    %c0_12 = arith.constant 0 : index
    %7 = vector.load %arg9[%c0_11, %c0_12] : memref<4x1xf32, #tpu.memory_space<vmem>>, vector<4x1xf32>
    %c0_13 = arith.constant 0 : index
    %c0_14 = arith.constant 0 : index
    %8 = vector.load %arg5[%c0_13, %c0_14] : memref<8x72xf32, #tpu.memory_space<vmem>>, vector<8x72xf32>
    %c0_15 = arith.constant 0 : index
    %c0_16 = arith.constant 0 : index
    %9 = vector.load %arg8[%c0_15, %c0_16] : memref<8x72xf32, #tpu.memory_space<vmem>>, vector<8x72xf32>
    %c0_17 = arith.constant 0 : index
    %c0_18 = arith.constant 0 : index
    %c0_19 = arith.constant 0 : index
    %10 = vector.load %arg2[%c0_17, %c0_18, %c0_19] : memref<1x4x256xf32, #tpu.memory_space<vmem>>, vector<1x4x256xf32>
    %11 = vector.shape_cast %10 : vector<1x4x256xf32> to vector<4x256xf32>
    %12 = vector.broadcast %3 : vector<4x1xf32> to vector<4x256xf32>
    %13 = arith.mulf %11, %12 : vector<4x256xf32>
    %14 = vector.broadcast %4 : vector<4x1xf32> to vector<4x256xf32>
    %15 = arith.addf %13, %14 : vector<4x256xf32>
    %cst_20 = arith.constant 0.000000e+00 : f32
    %16 = vector.broadcast %cst_20 : f32 to vector<4x256xf32>
    %17 = arith.cmpf ogt, %15, %16 : vector<4x256xf32>
    %cst_21 = arith.constant 0.00999999977 : f32
    %18 = vector.broadcast %cst_21 : f32 to vector<4x256xf32>
    %19 = arith.mulf %18, %15 : vector<4x256xf32>
    %20 = arith.select %17, %15, %19 : vector<4x256xi1>, vector<4x256xf32>
    %c0_22 = arith.constant 0 : index
    %c0_23 = arith.constant 0 : index
    %21 = vector.load %arg11[%c0_22, %c0_23] : memref<8x256xf32, #tpu.memory_space<vmem>>, vector<4x256xf32>
    tpu.vector_store %arg11[%c0_22, %c0_23], %20 {strides = array<i32>} : memref<8x256xf32, #tpu.memory_space<vmem>>, vector<4x256xf32>,
    %c0_24 = arith.constant 0 : index
    %c0_25 = arith.constant 0 : index
    %22 = vector.load %arg11[%c0_24, %c0_25] : memref<8x256xf32, #tpu.memory_space<vmem>>, vector<8x256xf32>
    %c17_i32 = arith.constant 17 : i32
    %23 = tpu.dynamic_rotate %22 by %c17_i32 dim 1 : vector<8x256xf32>, i32 -> vector<8x256xf32>
    %24 = vector.extract_strided_slice %0 {offsets = [0, 0], sizes = [1, 256], strides = [1, 1]} : vector<8x256xf32> to vector<1x256xf32>
    %25 = vector.broadcast %24 : vector<1x256xf32> to vector<8x256xf32>
    %26 = arith.mulf %23, %25 : vector<8x256xf32>
    %c0_26 = arith.constant 0 : index
    %c0_27 = arith.constant 0 : index
    %27 = vector.load %arg12[%c0_26, %c0_27] : memref<72x256xf32, #tpu.memory_space<vmem>>, vector<8x256xf32>
    tpu.vector_store %arg12[%c0_26, %c0_27], %26 {strides = array<i32>} : memref<72x256xf32, #tpu.memory_space<vmem>>, vector<8x256xf32>,
    %c16_i32 = arith.constant 16 : i32
    %28 = tpu.dynamic_rotate %22 by %c16_i32 dim 1 : vector<8x256xf32>, i32 -> vector<8x256xf32>
    %29 = vector.extract_strided_slice %0 {offsets = [1, 0], sizes = [1, 256], strides = [1, 1]} : vector<8x256xf32> to vector<1x256xf32>
    %30 = vector.broadcast %29 : vector<1x256xf32> to vector<8x256xf32>
    %31 = arith.mulf %28, %30 : vector<8x256xf32>
    %c8 = arith.constant 8 : index
    %c0_28 = arith.constant 0 : index
    %32 = vector.load %arg12[%c8, %c0_28] : memref<72x256xf32, #tpu.memory_space<vmem>>, vector<8x256xf32>
    tpu.vector_store %arg12[%c8, %c0_28], %31 {strides = array<i32>} : memref<72x256xf32, #tpu.memory_space<vmem>>, vector<8x256xf32>,
    %c15_i32 = arith.constant 15 : i32
    %33 = tpu.dynamic_rotate %22 by %c15_i32 dim 1 : vector<8x256xf32>, i32 -> vector<8x256xf32>
    %34 = vector.extract_strided_slice %0 {offsets = [2, 0], sizes = [1, 256], strides = [1, 1]} : vector<8x256xf32> to vector<1x256xf32>
    %35 = vector.broadcast %34 : vector<1x256xf32> to vector<8x256xf32>
    %36 = arith.mulf %33, %35 : vector<8x256xf32>
    %c16 = arith.constant 16 : index
    %c0_29 = arith.constant 0 : index
    %37 = vector.load %arg12[%c16, %c0_29] : memref<72x256xf32, #tpu.memory_space<vmem>>, vector<8x256xf32>
    tpu.vector_store %arg12[%c16, %c0_29], %36 {strides = array<i32>} : memref<72x256xf32, #tpu.memory_space<vmem>>, vector<8x256xf32>,
    %c1_i32 = arith.constant 1 : i32
    %38 = tpu.dynamic_rotate %22 by %c1_i32 dim 1 : vector<8x256xf32>, i32 -> vector<8x256xf32>
    %39 = vector.extract_strided_slice %0 {offsets = [3, 0], sizes = [1, 256], strides = [1, 1]} : vector<8x256xf32> to vector<1x256xf32>
    %40 = vector.broadcast %39 : vector<1x256xf32> to vector<8x256xf32>
    %41 = arith.mulf %38, %40 : vector<8x256xf32>
    %c24 = arith.constant 24 : index
    %c0_30 = arith.constant 0 : index
    %42 = vector.load %arg12[%c24, %c0_30] : memref<72x256xf32, #tpu.memory_space<vmem>>, vector<8x256xf32>
    tpu.vector_store %arg12[%c24, %c0_30], %41 {strides = array<i32>} : memref<72x256xf32, #tpu.memory_space<vmem>>, vector<8x256xf32>,
    %c32 = arith.constant 32 : index
    %c0_31 = arith.constant 0 : index
    %43 = vector.load %arg12[%c32, %c0_31] : memref<72x256xf32, #tpu.memory_space<vmem>>, vector<8x256xf32>
    tpu.vector_store %arg12[%c32, %c0_31], %22 {strides = array<i32>} : memref<72x256xf32, #tpu.memory_space<vmem>>, vector<8x256xf32>,
    %c255_i32 = arith.constant 255 : i32
    %44 = tpu.dynamic_rotate %22 by %c255_i32 dim 1 : vector<8x256xf32>, i32 -> vector<8x256xf32>
    %45 = vector.extract_strided_slice %0 {offsets = [4, 0], sizes = [1, 256], strides = [1, 1]} : vector<8x256xf32> to vector<1x256xf32>
    %46 = vector.broadcast %45 : vector<1x256xf32> to vector<8x256xf32>
    %47 = arith.mulf %44, %46 : vector<8x256xf32>
    %c40 = arith.constant 40 : index
    %c0_32 = arith.constant 0 : index
    %48 = vector.load %arg12[%c40, %c0_32] : memref<72x256xf32, #tpu.memory_space<vmem>>, vector<8x256xf32>
    tpu.vector_store %arg12[%c40, %c0_32], %47 {strides = array<i32>} : memref<72x256xf32, #tpu.memory_space<vmem>>, vector<8x256xf32>,
    %c241_i32 = arith.constant 241 : i32
    %49 = tpu.dynamic_rotate %22 by %c241_i32 dim 1 : vector<8x256xf32>, i32 -> vector<8x256xf32>
    %50 = vector.extract_strided_slice %0 {offsets = [5, 0], sizes = [1, 256], strides = [1, 1]} : vector<8x256xf32> to vector<1x256xf32>
    %51 = vector.broadcast %50 : vector<1x256xf32> to vector<8x256xf32>
    %52 = arith.mulf %49, %51 : vector<8x256xf32>
    %c48 = arith.constant 48 : index
    %c0_33 = arith.constant 0 : index
    %53 = vector.load %arg12[%c48, %c0_33] : memref<72x256xf32, #tpu.memory_space<vmem>>, vector<8x256xf32>
    tpu.vector_store %arg12[%c48, %c0_33], %52 {strides = array<i32>} : memref<72x256xf32, #tpu.memory_space<vmem>>, vector<8x256xf32>,
    %c240_i32 = arith.constant 240 : i32
    %54 = tpu.dynamic_rotate %22 by %c240_i32 dim 1 : vector<8x256xf32>, i32 -> vector<8x256xf32>
    %55 = vector.extract_strided_slice %0 {offsets = [6, 0], sizes = [1, 256], strides = [1, 1]} : vector<8x256xf32> to vector<1x256xf32>
    %56 = vector.broadcast %55 : vector<1x256xf32> to vector<8x256xf32>
    %57 = arith.mulf %54, %56 : vector<8x256xf32>
    %c56 = arith.constant 56 : index
    %c0_34 = arith.constant 0 : index
    %58 = vector.load %arg12[%c56, %c0_34] : memref<72x256xf32, #tpu.memory_space<vmem>>, vector<8x256xf32>
    tpu.vector_store %arg12[%c56, %c0_34], %57 {strides = array<i32>} : memref<72x256xf32, #tpu.memory_space<vmem>>, vector<8x256xf32>,
    %c239_i32 = arith.constant 239 : i32
    %59 = tpu.dynamic_rotate %22 by %c239_i32 dim 1 : vector<8x256xf32>, i32 -> vector<8x256xf32>
    %60 = vector.extract_strided_slice %0 {offsets = [7, 0], sizes = [1, 256], strides = [1, 1]} : vector<8x256xf32> to vector<1x256xf32>
    %61 = vector.broadcast %60 : vector<1x256xf32> to vector<8x256xf32>
    %62 = arith.mulf %59, %61 : vector<8x256xf32>
    %c64 = arith.constant 64 : index
    %c0_35 = arith.constant 0 : index
    %63 = vector.load %arg12[%c64, %c0_35] : memref<72x256xf32, #tpu.memory_space<vmem>>, vector<8x256xf32>
    tpu.vector_store %arg12[%c64, %c0_35], %62 {strides = array<i32>} : memref<72x256xf32, #tpu.memory_space<vmem>>, vector<8x256xf32>,
    %c0_36 = arith.constant 0 : index
    %c0_37 = arith.constant 0 : index
    %64 = vector.load %arg12[%c0_36, %c0_37] : memref<72x256xf32, #tpu.memory_space<vmem>>, vector<72x256xf32>
    %cst_38 = arith.constant dense<0.000000e+00> : vector<8x256xf32>
    %65 = tpu.matmul %8, %64, %cst_38 {dimension_numbers = #tpu.dot_dimension_numbers<[1], [0], [0], [1], [0, 0, 1, 1], [], []>} : vector<8x72xf32>, vector<72x256xf32>, vector<8x256xf32> -> vector<8x256xf32>
    %66 = vector.broadcast %5 : vector<8x1xf32> to vector<8x256xf32>
    %67 = arith.mulf %65, %66 : vector<8x256xf32>
    %68 = vector.broadcast %6 : vector<8x1xf32> to vector<8x256xf32>
    %69 = arith.addf %67, %68 : vector<8x256xf32>
    %cst_39 = arith.constant 0.000000e+00 : f32
    %70 = vector.broadcast %cst_39 : f32 to vector<8x256xf32>
    %71 = arith.cmpf ogt, %69, %70 : vector<8x256xf32>
    %cst_40 = arith.constant 0.00999999977 : f32
    %72 = vector.broadcast %cst_40 : f32 to vector<8x256xf32>
    %73 = arith.mulf %72, %69 : vector<8x256xf32>
    %74 = arith.select %71, %69, %73 : vector<8x256xi1>, vector<8x256xf32>
    %c17_i32_41 = arith.constant 17 : i32
    %75 = tpu.dynamic_rotate %74 by %c17_i32_41 dim 1 : vector<8x256xf32>, i32 -> vector<8x256xf32>
    %76 = vector.extract_strided_slice %0 {offsets = [0, 0], sizes = [1, 256], strides = [1, 1]} : vector<8x256xf32> to vector<1x256xf32>
    %77 = vector.broadcast %76 : vector<1x256xf32> to vector<8x256xf32>
    %78 = arith.mulf %75, %77 : vector<8x256xf32>
    %c0_42 = arith.constant 0 : index
    %c0_43 = arith.constant 0 : index
    %79 = vector.load %arg12[%c0_42, %c0_43] : memref<72x256xf32, #tpu.memory_space<vmem>>, vector<8x256xf32>
    tpu.vector_store %arg12[%c0_42, %c0_43], %78 {strides = array<i32>} : memref<72x256xf32, #tpu.memory_space<vmem>>, vector<8x256xf32>,
    %c16_i32_44 = arith.constant 16 : i32
    %80 = tpu.dynamic_rotate %74 by %c16_i32_44 dim 1 : vector<8x256xf32>, i32 -> vector<8x256xf32>
    %81 = vector.extract_strided_slice %0 {offsets = [1, 0], sizes = [1, 256], strides = [1, 1]} : vector<8x256xf32> to vector<1x256xf32>
    %82 = vector.broadcast %81 : vector<1x256xf32> to vector<8x256xf32>
    %83 = arith.mulf %80, %82 : vector<8x256xf32>
    %c8_45 = arith.constant 8 : index
    %c0_46 = arith.constant 0 : index
    %84 = vector.load %arg12[%c8_45, %c0_46] : memref<72x256xf32, #tpu.memory_space<vmem>>, vector<8x256xf32>
    tpu.vector_store %arg12[%c8_45, %c0_46], %83 {strides = array<i32>} : memref<72x256xf32, #tpu.memory_space<vmem>>, vector<8x256xf32>,
    %c15_i32_47 = arith.constant 15 : i32
    %85 = tpu.dynamic_rotate %74 by %c15_i32_47 dim 1 : vector<8x256xf32>, i32 -> vector<8x256xf32>
    %86 = vector.extract_strided_slice %0 {offsets = [2, 0], sizes = [1, 256], strides = [1, 1]} : vector<8x256xf32> to vector<1x256xf32>
    %87 = vector.broadcast %86 : vector<1x256xf32> to vector<8x256xf32>
    %88 = arith.mulf %85, %87 : vector<8x256xf32>
    %c16_48 = arith.constant 16 : index
    %c0_49 = arith.constant 0 : index
    %89 = vector.load %arg12[%c16_48, %c0_49] : memref<72x256xf32, #tpu.memory_space<vmem>>, vector<8x256xf32>
    tpu.vector_store %arg12[%c16_48, %c0_49], %88 {strides = array<i32>} : memref<72x256xf32, #tpu.memory_space<vmem>>, vector<8x256xf32>,
    %c1_i32_50 = arith.constant 1 : i32
    %90 = tpu.dynamic_rotate %74 by %c1_i32_50 dim 1 : vector<8x256xf32>, i32 -> vector<8x256xf32>
    %91 = vector.extract_strided_slice %0 {offsets = [3, 0], sizes = [1, 256], strides = [1, 1]} : vector<8x256xf32> to vector<1x256xf32>
    %92 = vector.broadcast %91 : vector<1x256xf32> to vector<8x256xf32>
    %93 = arith.mulf %90, %92 : vector<8x256xf32>
    %c24_51 = arith.constant 24 : index
    %c0_52 = arith.constant 0 : index
    %94 = vector.load %arg12[%c24_51, %c0_52] : memref<72x256xf32, #tpu.memory_space<vmem>>, vector<8x256xf32>
    tpu.vector_store %arg12[%c24_51, %c0_52], %93 {strides = array<i32>} : memref<72x256xf32, #tpu.memory_space<vmem>>, vector<8x256xf32>,
    %c32_53 = arith.constant 32 : index
    %c0_54 = arith.constant 0 : index
    %95 = vector.load %arg12[%c32_53, %c0_54] : memref<72x256xf32, #tpu.memory_space<vmem>>, vector<8x256xf32>
    tpu.vector_store %arg12[%c32_53, %c0_54], %74 {strides = array<i32>} : memref<72x256xf32, #tpu.memory_space<vmem>>, vector<8x256xf32>,
    %c255_i32_55 = arith.constant 255 : i32
    %96 = tpu.dynamic_rotate %74 by %c255_i32_55 dim 1 : vector<8x256xf32>, i32 -> vector<8x256xf32>
    %97 = vector.extract_strided_slice %0 {offsets = [4, 0], sizes = [1, 256], strides = [1, 1]} : vector<8x256xf32> to vector<1x256xf32>
    %98 = vector.broadcast %97 : vector<1x256xf32> to vector<8x256xf32>
    %99 = arith.mulf %96, %98 : vector<8x256xf32>
    %c40_56 = arith.constant 40 : index
    %c0_57 = arith.constant 0 : index
    %100 = vector.load %arg12[%c40_56, %c0_57] : memref<72x256xf32, #tpu.memory_space<vmem>>, vector<8x256xf32>
    tpu.vector_store %arg12[%c40_56, %c0_57], %99 {strides = array<i32>} : memref<72x256xf32, #tpu.memory_space<vmem>>, vector<8x256xf32>,
    %c241_i32_58 = arith.constant 241 : i32
    %101 = tpu.dynamic_rotate %74 by %c241_i32_58 dim 1 : vector<8x256xf32>, i32 -> vector<8x256xf32>
    %102 = vector.extract_strided_slice %0 {offsets = [5, 0], sizes = [1, 256], strides = [1, 1]} : vector<8x256xf32> to vector<1x256xf32>
    %103 = vector.broadcast %102 : vector<1x256xf32> to vector<8x256xf32>
    %104 = arith.mulf %101, %103 : vector<8x256xf32>
    %c48_59 = arith.constant 48 : index
    %c0_60 = arith.constant 0 : index
    %105 = vector.load %arg12[%c48_59, %c0_60] : memref<72x256xf32, #tpu.memory_space<vmem>>, vector<8x256xf32>
    tpu.vector_store %arg12[%c48_59, %c0_60], %104 {strides = array<i32>} : memref<72x256xf32, #tpu.memory_space<vmem>>, vector<8x256xf32>,
    %c240_i32_61 = arith.constant 240 : i32
    %106 = tpu.dynamic_rotate %74 by %c240_i32_61 dim 1 : vector<8x256xf32>, i32 -> vector<8x256xf32>
    %107 = vector.extract_strided_slice %0 {offsets = [6, 0], sizes = [1, 256], strides = [1, 1]} : vector<8x256xf32> to vector<1x256xf32>
    %108 = vector.broadcast %107 : vector<1x256xf32> to vector<8x256xf32>
    %109 = arith.mulf %106, %108 : vector<8x256xf32>
    %c56_62 = arith.constant 56 : index
    %c0_63 = arith.constant 0 : index
    %110 = vector.load %arg12[%c56_62, %c0_63] : memref<72x256xf32, #tpu.memory_space<vmem>>, vector<8x256xf32>
    tpu.vector_store %arg12[%c56_62, %c0_63], %109 {strides = array<i32>} : memref<72x256xf32, #tpu.memory_space<vmem>>, vector<8x256xf32>,
    %c239_i32_64 = arith.constant 239 : i32
    %111 = tpu.dynamic_rotate %74 by %c239_i32_64 dim 1 : vector<8x256xf32>, i32 -> vector<8x256xf32>
    %112 = vector.extract_strided_slice %0 {offsets = [7, 0], sizes = [1, 256], strides = [1, 1]} : vector<8x256xf32> to vector<1x256xf32>
    %113 = vector.broadcast %112 : vector<1x256xf32> to vector<8x256xf32>
    %114 = arith.mulf %111, %113 : vector<8x256xf32>
    %c64_65 = arith.constant 64 : index
    %c0_66 = arith.constant 0 : index
    %115 = vector.load %arg12[%c64_65, %c0_66] : memref<72x256xf32, #tpu.memory_space<vmem>>, vector<8x256xf32>
    tpu.vector_store %arg12[%c64_65, %c0_66], %114 {strides = array<i32>} : memref<72x256xf32, #tpu.memory_space<vmem>>, vector<8x256xf32>,
    %c0_67 = arith.constant 0 : index
    %c0_68 = arith.constant 0 : index
    %116 = vector.load %arg12[%c0_67, %c0_68] : memref<72x256xf32, #tpu.memory_space<vmem>>, vector<72x256xf32>
    %cst_69 = arith.constant dense<0.000000e+00> : vector<8x256xf32>
    %117 = tpu.matmul %9, %116, %cst_69 {dimension_numbers = #tpu.dot_dimension_numbers<[1], [0], [0], [1], [0, 0, 1, 1], [], []>} : vector<8x72xf32>, vector<72x256xf32>, vector<8x256xf32> -> vector<8x256xf32>
    %118 = vector.extract_strided_slice %117 {offsets = [0, 0], sizes = [4, 256], strides = [1, 1]} : vector<8x256xf32> to vector<4x256xf32>
    %119 = vector.broadcast %7 : vector<4x1xf32> to vector<4x256xf32>
    %120 = arith.addf %118, %119 : vector<4x256xf32>
    %121 = arith.addf %120, %11 : vector<4x256xf32>
    %c0_70 = arith.constant 0 : index
    %c0_71 = arith.constant 0 : index
    %c0_72 = arith.constant 0 : index
    %122 = vector.load %arg10[%c0_70, %c0_71, %c0_72] : memref<1x4x256xf32, #tpu.memory_space<vmem>>, vector<1x4x256xf32>
    %123 = vector.shape_cast %122 : vector<1x4x256xf32> to vector<4x256xf32>
    %124 = vector.shape_cast %121 : vector<4x256xf32> to vector<1x4x256xf32>
    tpu.vector_store %arg10[%c0_70, %c0_71, %c0_72], %124 {strides = array<i32>} : memref<1x4x256xf32, #tpu.memory_space<vmem>>, vector<1x4x256xf32>,
    return
  }
  func.func @transform_0(%arg0: i32) -> (i32, i32) {
    %c0_i32 = arith.constant 0 : i32
    %c0_i32_0 = arith.constant 0 : i32
    %c0_i32_1 = arith.constant 0 : i32
    return %c0_i32, %c0_i32_0 : i32, i32
  }
  func.func @transform_1(%arg0: i32) -> (i32, i32, i32) {
    %c0_i32 = arith.constant 0 : i32
    %c0_i32_0 = arith.constant 0 : i32
    %c0_i32_1 = arith.constant 0 : i32
    return %arg0, %c0_i32, %c0_i32_0 : i32, i32, i32
  }
  func.func @transform_2(%arg0: i32) -> (i32, i32) {
    %c0_i32 = arith.constant 0 : i32
    %c0_i32_0 = arith.constant 0 : i32
    %c0_i32_1 = arith.constant 0 : i32
    return %c0_i32, %c0_i32_0 : i32, i32
  }
  func.func @transform_3(%arg0: i32) -> (i32, i32) {
    %c0_i32 = arith.constant 0 : i32
    %c0_i32_0 = arith.constant 0 : i32
    %c0_i32_1 = arith.constant 0 : i32
    return %c0_i32, %c0_i32_0 : i32, i32
  }
  func.func @transform_4(%arg0: i32) -> (i32, i32) {
    %c0_i32 = arith.constant 0 : i32
    %c0_i32_0 = arith.constant 0 : i32
    %c0_i32_1 = arith.constant 0 : i32
    return %c0_i32, %c0_i32_0 : i32, i32
  }
  func.func @transform_5(%arg0: i32) -> (i32, i32) {
    %c0_i32 = arith.constant 0 : i32
    %c0_i32_0 = arith.constant 0 : i32
    %c0_i32_1 = arith.constant 0 : i32
    return %c0_i32, %c0_i32_0 : i32, i32
  }
  func.func @transform_6(%arg0: i32) -> (i32, i32) {
    %c0_i32 = arith.constant 0 : i32
    %c0_i32_0 = arith.constant 0 : i32
    %c0_i32_1 = arith.constant 0 : i32
    return %c0_i32, %c0_i32_0 : i32, i32
  }
  func.func @transform_7(%arg0: i32) -> (i32, i32) {
    %c0_i32 = arith.constant 0 : i32
    %c0_i32_0 = arith.constant 0 : i32
    %c0_i32_1 = arith.constant 0 : i32
    return %c0_i32, %c0_i32_0 : i32, i32
  }
  func.func @transform_8(%arg0: i32) -> (i32, i32) {
    %c0_i32 = arith.constant 0 : i32
    %c0_i32_0 = arith.constant 0 : i32
    %c0_i32_1 = arith.constant 0 : i32
    return %c0_i32, %c0_i32_0 : i32, i32
  }
  func.func @transform_9(%arg0: i32) -> (i32, i32, i32) {
    %c0_i32 = arith.constant 0 : i32
    %c0_i32_0 = arith.constant 0 : i32
    %c0_i32_1 = arith.constant 0 : i32
    return %arg0, %c0_i32, %c0_i32_0 : i32, i32, i32
  }
}

</mosaic_0001>

<bundles_post_ra>
// kernel: repeat_block_pallas.1
= control target key start
LH: loop header
LB: loop body
LE: loop exit
PB: predicated region body
PF: predicated region fallthrough
CT: control target
= control target key end

     0   :  { %s1034_s30 = smov 0   ;;  %s1327_s0 = inlined_call_operand.vmem [shape: f32[8,256], index: 0, kind: input, shape index: {}]   ;;  %s1328_s1 = inlined_call_operand.vmem [shape: f32[2,4,256], index: 1, kind: input, shape index: {}]   ;;  %s1329_s2 = inlined_call_operand.vmem [shape: f32[4,1], index: 2, kind: input, shape index: {}]   ;;  %s1330_s3 = inlined_call_operand.vmem [shape: f32[4,1], index: 3, kind: input, shape index: {}]   ;;  %s1331_s4 = inlined_call_operand.vmem [shape: f32[8,72], index: 4, kind: input, shape index: {}]   ;;  %s1332_s5 = inlined_call_operand.vmem [shape: f32[8,1], index: 5, kind: input, shape index: {}]   ;;  %s1333_s6 = inlined_call_operand.vmem [shape: f32[8,1], index: 6, kind: input, shape index: {}]   ;;  %s1334_s7 = inlined_call_operand.vmem [shape: f32[8,72], index: 7, kind: input, shape index: {}]   ;;  %s1335_s8 = inlined_call_operand.vmem [shape: f32[4,1], index: 8, kind: input, shape index: {}]   ;;  %s1336_s9 = inlined_call_operand.vmem [shape: f32[2,4,256], index: 9, kind: output, shape index: {}]  }
   0x1 LB: > { %s896_s10 = sadd.s32 4294967295, %s971_s30   ;;  %p900_p0 = scmp.ge.s32.totalorder %s971_s30, 1  ;;  %s971_s30 = sphi %s1034_s30, %s19_s30  }
   0x2   : > { %p287_p1 = scmp.lt.s32.totalorder %s971_s30, 3 }
   0x4   : > { %p288_p2 = pnand %p900_p0, %p287_p1 }
   0x5   : > { %v337_v0 = vld [vmem:[%s1329_s2] sm:$0xf] (!%p288_p2)  ;;  %v973_v1 = vmov (!%p288_p2), 0   ;;  %v974_v3 = vmov (!%p288_p2), 0.0   ;;  %p323_p3 = scmp.lt.s32.totalorder (!%p288_p2), %s896_s10, 1  ;;  %v352_v6 = vlaneseq (!%p288_p2)  ;;  %s976_s19 = smov (!%p288_p2), 16  }
   0x6   : > { %291 = sbr.rel (%p288_p2) target bundleno = 898 (0x382), region = 56  ;;  %962 = vset.pattern.permute.xlu0 (!%p288_p2), %v973_v1  ;;  %963 = vset.pattern.permute.xlu1 (!%p288_p2), %v973_v1  ;;  %v338_v2 = vld [vmem:[%s1330_s3] sm:$0xf] (!%p288_p2)  ;;  %335 = vst [vmem:[#allocation2] sm:$0xff] (!%p288_p2), %v974_v3  ;;  %336 = vst [vmem:[#allocation2 + $0x8] sm:$0xff] (!%p288_p2), %v974_v3  ;;  %s977_s20 = smov (!%p288_p2), 17  }
   0x7   : > { %347 = vperm.xlu0 (!%p288_p2), %962, %v337_v0   ;;  %623 = vmatprep.mubr.f32.mxu0 (!%p288_p2), %v974_v3  ;;  %v975_v4 = vmov (!%p288_p2), 839922192   ;;  %v1050_v8 = vshrl.u32 (!%p288_p2), %v352_v6, 7  ;;  %s978_s21 = smov (!%p288_p2), 15   ;;  %s979_s22 = smov (!%p288_p2), 1   ;;  %v339_v22 = vld [vmem:[%s1332_s5] sm:$0xff] (!%p288_p2) }
   0x8   : > { %817 = vmatprep.mubr.f32.mxu1 (!%p288_p2), %v974_v3  ;;  %v350_v5 = vunpack.c.l.s4 (!%p288_p2), %v975_v4  ;;  %s980_s23 = smov (!%p288_p2), 127   ;;  %s981_s24 = smov (!%p288_p2), 113   ;;  %v340_v23 = vld [vmem:[%s1333_s6] sm:$0xff] (!%p288_p2)  ;;  %v1104_v26 = vand.u32 (!%p288_p2), 127, %v352_v6  ;;  %v1116_v30 = vld [vmem:[%s1327_s0 + $0x8] sm:$0xff] (!%p288_p2)  ;;  %vm555_vm9 = vcmask (!%p288_p2), 588800  }
   0x9   : > { %s982_s25 = smov (!%p288_p2), 112   ;;  %s983_s26 = smov (!%p288_p2), 111   ;;  %v392_v27 = vsub.s32 (!%p288_p2), 0, %v1050_v8  ;;  %v1110_v28 = vld [vmem:[%s1327_s0] sm:$0xff] (!%p288_p2)  ;;  %v411_v29 = vsub.s32 (!%p288_p2), 1, %v1050_v8  ;;  %v430_v43 = vsub.s32 (!%p288_p2), 2, %v1050_v8 }
   0xa   : > { %v351_v7 = vunpack.c.0.s8 (!%p288_p2), %v350_v5  ;;  %vm387_vm1 = vcmp.lt.s32.totalorder (!%p288_p2), %v1104_v26, 17  ;;  %vm406_vm2 = vcmp.lt.s32.totalorder (!%p288_p2), %v1104_v26, 16  ;;  %v449_v44 = vsub.s32 (!%p288_p2), 3, %v1050_v8 }
   0xb   : > { %360 = vperm.xlu0 (!%p288_p2), %962, %v338_v2   ;;  %v1120_v33 = vrot.slane (!%p288_p2), %v1110_v28, %v392_v27  ;;  %v1124_v34 = vrot.slane (!%p288_p2), %v1110_v28, %v411_v29  ;;  %v1127_v35 = vrot.slane (!%p288_p2), %v1116_v30, %v392_v27  ;;  %v1130_v36 = vrot.slane (!%p288_p2), %v1116_v30, %v411_v29 }
   0xc   : > { %v354_v9 = vsub.s32 (!%p288_p2), %v351_v7, %v1050_v8  ;;  %vm425_vm3 = vcmp.lt.s32.totalorder (!%p288_p2), %v1104_v26, 15  ;;  %v1148_v52 = vrot.slane (!%p288_p2), %v1110_v28, %v430_v43  ;;  %v470_v53 = vsub.s32 (!%p288_p2), 4, %v1050_v8 }
   0xd   : > { %s1338_s10 = smov (!%p323_p3, %s896_s10), 1  ;;  %v1152_v55 = vrot.slane %v1116_v30, %v430_v43  ;;  %vm444_vm4 = vcmp.lt.s32.totalorder %v1104_v26, 1  ;;  %v1156_v56 = vrot.slane %v1110_v28, %v449_v44  ;;  %v1159_v57 = vrot.slane %v1116_v30, %v449_v44 }
   0xe   : > { %s909_s15 = sshll.u32 %s1338_s10, 3  ;;  %vm465_vm5 = vcmp.lt.s32.totalorder %v1104_v26, 127  ;;  %v1171_v63 = vrot.slane %v1110_v28, %v470_v53  ;;  %v1174_v0 = vrot.slane %v1116_v30, %v470_v53  ;;  %vm484_vm6 = vcmp.lt.s32.totalorder %v1104_v26, 113 }
   0xf   : > { %s327_s18 = scalar_lea.vmem %s1328_s1, %s909_s15  ;;  %vm503_vm7 = vcmp.lt.s32.totalorder %v1104_v26, 112  ;;  %vm522_vm8 = vcmp.lt.s32.totalorder %v1104_v26, 111 }
  0x10   : > { %v1059_v12 = vld [vmem:[%s327_s18] sm:$0xff] }
  0x11   : > { %v832_v26 = vcombine.high %v1059_v12, %v1059_v12 }
  0x86   : > { %v348_v10 = vpop.permute.xlu0 %347 }
  0x87   : > { %v355_v11 = vrot.slane %v348_v10, %v354_v9 }
  0x89   : > { %v357_v14 = vmul.f32 %v355_v11, %v1059_v12 }
  0x8a   : > { %v361_v13 = vpop.permute.xlu0 %360 }
  0x8b   : > { %v368_v15 = vrot.slane %v361_v13, %v354_v9  ;;  %v489_v13 = vsub.s32 5, %v1050_v8 }
  0x8d   : > { %v370_v16 = vadd.f32 %v368_v15, %v357_v14 }
  0x8f   : > { %vm371_vm0 = vcmp.gt.f32.partialorder %v370_v16, 0.0  ;;  %v372_v17 = vmul.f32 0.01, %v370_v16 }
  0x91   : > { %v373_v18 = vsel %vm371_vm0, %v370_v16, %v372_v17  ;;  %v508_v16 = vsub.s32 6, %v1050_v8 }
  0x92   : > { %v375_v19 = vcombine.high %v373_v18, %v373_v18  ;;  %377 = vst [vmem:[#allocation2] sm:$0xf] %v373_v18 }
  0x93   : > { %v1200_v27 = vrot.slane %v1110_v28, %v508_v16  ;;  %v1203_v29 = vrot.slane %v1116_v30, %v508_v16 }
  0x94   : > { %378 = vst [vmem:[#allocation2 + $0x8] sm:$0xf] %v375_v19 }
  0x99   : > { %v1062_v20 = vld [vmem:[#allocation2] sm:$0xff] }
  0x9a   : > { %402 = vrot.lane.b32.xlu0 %v1062_v20, %s976_s19  ;;  %381 = vrot.lane.b32.xlu1 %v1062_v20, %s977_s20 }
  0x9b   : > { %v1068_v21 = vld [vmem:[#allocation2 + $0x8] sm:$0xff] }
  0x9e   : > { %421 = vrot.lane.b32.xlu0 %v1062_v20, %s978_s21  ;;  %383 = vrot.lane.b32.xlu1 %v1068_v21, %s977_s20 }
  0xa2   : > { %440 = vrot.lane.b32.xlu0 %v1062_v20, %s979_s22  ;;  %404 = vrot.lane.b32.xlu1 %v1068_v21, %s976_s19 }
  0xa6   : > { %461 = vrot.lane.b32.xlu0 %v1062_v20, %s980_s23  ;;  %423 = vrot.lane.b32.xlu1 %v1068_v21, %s978_s21 }
  0xaa   : > { %480 = vrot.lane.b32.xlu0 %v1062_v20, %s981_s24  ;;  %442 = vrot.lane.b32.xlu1 %v1068_v21, %s979_s22 }
  0xae   : > { %499 = vrot.lane.b32.xlu0 %v1062_v20, %s982_s25  ;;  %463 = vrot.lane.b32.xlu1 %v1068_v21, %s980_s23 }
  0xb2   : > { %518 = vrot.lane.b32.xlu0 %v1062_v20, %s983_s26  ;;  %482 = vrot.lane.b32.xlu1 %v1068_v21, %s981_s24 }
  0xb6   : > { %632 = vperm.xlu0 %962, %v339_v22   ;;  %501 = vrot.lane.b32.xlu1 %v1068_v21, %s982_s25  ;;  %v1192_v22 = vrot.slane %v1110_v28, %v489_v13 }
  0xba   : > { %520 = vrot.lane.b32.xlu1 %v1068_v21, %s983_s26 }
  0xbe   : > { %639 = vperm.xlu1 %963, %v340_v23   ;;  %v527_v23 = vsub.s32 7, %v1050_v8 }
 0x10c   : > { %v403_v24 = vpop.permute.xlu0 %402  ;;  %v382_v25 = vpop.permute.xlu1 %381 }
 0x110   : > { %v422_v31 = vpop.permute.xlu0 %421  ;;  %v384_v32 = vpop.permute.xlu1 %383 }
 0x111   : > { %v388_v37 = vsel %vm387_vm1, %v382_v25, %v384_v32  ;;  %v389_v38 = vsel %vm387_vm1, %v384_v32, %v382_v25  ;;  %v1196_v25 = vrot.slane %v1116_v30, %v489_v13 }
 0x112   : > { %v398_v45 = vmul.f32 %v1120_v33, %v389_v38  ;;  %v399_v47 = vmul.f32 %v1127_v35, %v388_v37  ;;  %v1215_v37 = vrot.slane %v1116_v30, %v527_v23 }
 0x114   : > { %v441_v39 = vpop.permute.xlu0 %440  ;;  %v405_v40 = vpop.permute.xlu1 %404 }
 0x115   : > { %v407_v41 = vsel %vm406_vm2, %v403_v24, %v405_v40  ;;  %v408_v42 = vsel %vm406_vm2, %v405_v40, %v403_v24 }
 0x116   : > { %v417_v46 = vmul.f32 %v1124_v34, %v408_v42  ;;  %v418_v48 = vmul.f32 %v1130_v36, %v407_v41 }
 0x118   : > { %v424_v49 = vpop.permute.xlu1 %423  ;;  %v911_v50 = vpack.c.bf16 %v418_v48, %v399_v47  ;;  %v913_v51 = vpack.c.bf16 %v417_v46, %v398_v45  ;;  %v462_v54 = vpop.permute.xlu0 %461  ;;  %v1222_v46 = vrot.slane %v1110_v28, %v527_v23 }
 0x119   : > { %v426_v58 = vsel %vm425_vm3, %v422_v31, %v424_v49  ;;  %v427_v59 = vsel %vm425_vm3, %v424_v49, %v422_v31 }
 0x11a   : > { %912 = vmatprep.subr.bf16.mxu0 %v911_v50  ;;  %v436_v1 = vmul.f32 %v1148_v52, %v427_v59  ;;  %v437_v2 = vmul.f32 %v1152_v55, %v426_v58  ;;  %v342_v50 = vld [vmem:[%s1331_s4] sm:$0xff] }
 0x11b   : > { %914 = vmatpush1.bf16.msra.mxu0 %v913_v51 }
 0x11c   : > { %v443_v60 = vpop.permute.xlu1 %442  ;;  %v481_v5 = vpop.permute.xlu0 %480 }
 0x11d   : > { %v445_v61 = vsel %vm444_vm4, %v441_v39, %v443_v60  ;;  %v446_v62 = vsel %vm444_vm4, %v443_v60, %v441_v39 }
 0x11e   : > { %v455_v3 = vmul.f32 %v1156_v56, %v446_v62  ;;  %v456_v4 = vmul.f32 %v1159_v57, %v445_v61 }
 0x120   : > { %v464_v6 = vpop.permute.xlu1 %463  ;;  %v915_v7 = vpack.c.bf16 %v456_v4, %v437_v2  ;;  %v917_v9 = vpack.c.bf16 %v455_v3, %v436_v1  ;;  %v500_v24 = vpop.permute.xlu0 %499  ;;  %v341_v4 = vld [vmem:[%s1335_s8] sm:$0xf] }
 0x121   : > { %v466_v10 = vsel %vm465_vm5, %v462_v54, %v464_v6  ;;  %v467_v11 = vsel %vm465_vm5, %v464_v6, %v462_v54 }
 0x122   : > { %v476_v14 = vmul.f32 %v1171_v63, %v466_v10  ;;  %v477_v15 = vmul.f32 %v1174_v0, %v467_v11  ;;  %916 = vmatprep.subr.bf16.mxu0 %v915_v7 }
 0x123   : > { %918 = vmatpush1.bf16.msra.mxu0 %v917_v9 }
 0x124   : > { %v483_v17 = vpop.permute.xlu1 %482  ;;  %v919_v18 = vpack.c.bf16 %v477_v15, %v1068_v21  ;;  %v921_v19 = vpack.c.bf16 %v476_v14, %v1062_v20  ;;  %v519_v42 = vpop.permute.xlu0 %518 }
 0x125   : > { %v485_v20 = vsel %vm484_vm6, %v481_v5, %v483_v17  ;;  %v486_v21 = vsel %vm484_vm6, %v483_v17, %v481_v5 }
 0x126   : > { %920 = vmatprep.subr.bf16.mxu0 %v919_v18  ;;  %v495_v38 = vmul.f32 %v1192_v22, %v485_v20  ;;  %v496_v39 = vmul.f32 %v1196_v25, %v486_v21 }
 0x127   : > { %922 = vmatpush1.bf16.msra.mxu0 %v921_v19 }
 0x128   : > { %v502_v8 = vpop.permute.xlu1 %501 }
 0x129   : > { %v504_v31 = vsel %vm503_vm7, %v500_v24, %v502_v8  ;;  %v505_v32 = vsel %vm503_vm7, %v502_v8, %v500_v24 }
 0x12a   : > { %v514_v40 = vmul.f32 %v1200_v27, %v504_v31  ;;  %v515_v41 = vmul.f32 %v1203_v29, %v505_v32 }
 0x12c   : > { %v521_v43 = vpop.permute.xlu1 %520  ;;  %v923_v44 = vpack.c.bf16 %v515_v41, %v496_v39  ;;  %v925_v45 = vpack.c.bf16 %v514_v40, %v495_v38 }
 0x12d   : > { %v524_v47 = vsel %vm522_vm8, %v521_v43, %v519_v42  ;;  %v523_v30 = vsel %vm522_vm8, %v519_v42, %v521_v43 }
 0x12e   : > { %v534_v48 = vmul.f32 %v1215_v37, %v524_v47  ;;  %924 = vmatprep.subr.bf16.mxu0 %v923_v44  ;;  %v533_v49 = vmul.f32 %v1222_v46, %v523_v30 }
 0x12f   : > { %926 = vmatpush1.bf16.msra.mxu0 %v925_v45 }
 0x130   : > { %575 = vmatprep.subr.mxu0 %v534_v48 }
 0x133   : > { %576 = vmatpush1.msra.mxu0 %v533_v49 }
 0x134   : > { %905 = vmatmul.mubr.msk.f32.vlgmr.msra.gmra.mrb[0].mxu0 %vm555_vm9, %v342_v50 }
 0x135   : > { %v633_v28 = vpop.permute.xlu0 %632 }
 0x13d   : > { %v640_v53 = vpop.permute.xlu1 %639 }
 0x207   : > { %v625_v51 = vpop.f32.mrb[0].mxu0 }
 0x208   : > { %v635_v54 = vmul.f32 %v633_v28, %v625_v51  ;;  %v627_v58 = vpop.f32.mrb[1].mxu0 }
 0x209   : > { %v636_v59 = vmul.f32 %v633_v28, %v627_v58 }
 0x20a   : > { %v642_v60 = vadd.f32 %v640_v53, %v635_v54 }
 0x20b   : > { %v643_v61 = vadd.f32 %v640_v53, %v636_v59 }
 0x20c   : > { %vm644_vm10 = vcmp.gt.f32.partialorder %v642_v60, 0.0  ;;  %v646_v62 = vmul.f32 0.01, %v642_v60 }
 0x20d   : > { %vm645_vm11 = vcmp.gt.f32.partialorder %v643_v61, 0.0  ;;  %v647_v1 = vmul.f32 0.01, %v643_v61 }
 0x20e   : > { %v1234_v2 = vsel %vm644_vm10, %v642_v60, %v646_v62 }
 0x20f   : > { %v649_v3 = vsel %vm645_vm11, %v643_v61, %v647_v1  ;;  %650 = vrot.lane.b32.xlu0 %v1234_v2, %s977_s20 }
 0x210   : > { %652 = vrot.lane.b32.xlu1 %v649_v3, %s977_s20 }
 0x213   : > { %660 = vrot.lane.b32.xlu0 %v1234_v2, %s976_s19 }
 0x214   : > { %662 = vrot.lane.b32.xlu1 %v649_v3, %s976_s19 }
 0x217   : > { %670 = vrot.lane.b32.xlu0 %v1234_v2, %s978_s21 }
 0x218   : > { %672 = vrot.lane.b32.xlu1 %v649_v3, %s978_s21 }
 0x21b   : > { %680 = vrot.lane.b32.xlu0 %v1234_v2, %s979_s22 }
 0x21c   : > { %682 = vrot.lane.b32.xlu1 %v649_v3, %s979_s22 }
 0x21f   : > { %692 = vrot.lane.b32.xlu0 %v1234_v2, %s980_s23 }
 0x220   : > { %694 = vrot.lane.b32.xlu1 %v649_v3, %s980_s23 }
 0x223   : > { %702 = vrot.lane.b32.xlu0 %v1234_v2, %s981_s24 }
 0x224   : > { %704 = vrot.lane.b32.xlu1 %v649_v3, %s981_s24 }
 0x227   : > { %712 = vrot.lane.b32.xlu0 %v1234_v2, %s982_s25 }
 0x228   : > { %714 = vrot.lane.b32.xlu1 %v649_v3, %s982_s25  ;;  %s332_s25 = scalar_lea.vmem %s1336_s9, %s909_s15 }
 0x22b   : > { %722 = vrot.lane.b32.xlu0 %v1234_v2, %s983_s26 }
 0x22c   : > { %724 = vrot.lane.b32.xlu1 %v649_v3, %s983_s26 }
 0x22f   : > { %826 = vperm.xlu0 %962, %v341_v4  }
 0x281   : > { %v651_v5 = vpop.permute.xlu0 %650 }
 0x282   : > { %v653_v6 = vpop.permute.xlu1 %652 }
 0x283   : > { %v654_v7 = vsel %vm387_vm1, %v651_v5, %v653_v6  ;;  %v655_v9 = vsel %vm387_vm1, %v653_v6, %v651_v5 }
 0x284   : > { %v656_v15 = vmul.f32 %v655_v9, %v1120_v33  ;;  %v657_v17 = vmul.f32 %v654_v7, %v1127_v35 }
 0x285   : > { %v661_v10 = vpop.permute.xlu0 %660 }
 0x286   : > { %v663_v11 = vpop.permute.xlu1 %662 }
 0x287   : > { %v664_v13 = vsel %vm406_vm2, %v661_v10, %v663_v11  ;;  %v665_v14 = vsel %vm406_vm2, %v663_v11, %v661_v10 }
 0x288   : > { %v666_v16 = vmul.f32 %v665_v14, %v1124_v34  ;;  %v667_v18 = vmul.f32 %v664_v13, %v1130_v36 }
 0x289   : > { %v671_v19 = vpop.permute.xlu0 %670 }
 0x28a   : > { %v673_v23 = vpop.permute.xlu1 %672  ;;  %v927_v24 = vpack.c.bf16 %v667_v18, %v657_v17  ;;  %v929_v20 = vpack.c.bf16 %v666_v16, %v656_v15 }
 0x28b   : > { %v674_v21 = vsel %vm425_vm3, %v671_v19, %v673_v23  ;;  %v675_v8 = vsel %vm425_vm3, %v673_v23, %v671_v19 }
 0x28c   : > { %928 = vmatprep.subr.bf16.mxu1 %v927_v24  ;;  %v676_v36 = vmul.f32 %v675_v8, %v1148_v52  ;;  %v677_v32 = vmul.f32 %v674_v21, %v1152_v55 }
 0x28d   : > { %930 = vmatpush1.bf16.msra.mxu1 %v929_v20  ;;  %v681_v31 = vpop.permute.xlu0 %680 }
 0x28e   : > { %v683_v33 = vpop.permute.xlu1 %682 }
 0x28f   : > { %v684_v34 = vsel %vm444_vm4, %v681_v31, %v683_v33  ;;  %v685_v35 = vsel %vm444_vm4, %v683_v33, %v681_v31 }
 0x290   : > { %v686_v38 = vmul.f32 %v685_v35, %v1156_v56  ;;  %v687_v39 = vmul.f32 %v684_v34, %v1159_v57 }
 0x291   : > { %v693_v40 = vpop.permute.xlu0 %692 }
 0x292   : > { %v695_v41 = vpop.permute.xlu1 %694  ;;  %v931_v42 = vpack.c.bf16 %v687_v39, %v677_v32  ;;  %v933_v43 = vpack.c.bf16 %v686_v38, %v676_v36 }
 0x293   : > { %v696_v44 = vsel %vm465_vm5, %v693_v40, %v695_v41  ;;  %v697_v45 = vsel %vm465_vm5, %v695_v41, %v693_v40 }
 0x294   : > { %v698_v47 = vmul.f32 %v696_v44, %v1171_v63  ;;  %v699_v52 = vmul.f32 %v697_v45, %v1174_v0  ;;  %932 = vmatprep.subr.bf16.mxu1 %v931_v42 }
 0x295   : > { %934 = vmatpush1.bf16.msra.mxu1 %v933_v43  ;;  %v703_v55 = vpop.permute.xlu0 %702 }
 0x296   : > { %v705_v56 = vpop.permute.xlu1 %704  ;;  %v935_v30 = vpack.c.bf16 %v699_v52, %v649_v3  ;;  %v937_v57 = vpack.c.bf16 %v698_v47, %v1234_v2 }
 0x297   : > { %v706_v48 = vsel %vm484_vm6, %v703_v55, %v705_v56  ;;  %v707_v49 = vsel %vm484_vm6, %v705_v56, %v703_v55 }
 0x298   : > { %936 = vmatprep.subr.bf16.mxu1 %v935_v30  ;;  %v708_v51 = vmul.f32 %v706_v48, %v1192_v22  ;;  %v709_v53 = vmul.f32 %v707_v49, %v1196_v25  ;;  %v343_v25 = vld [vmem:[%s1334_s7] sm:$0xff] }
 0x299   : > { %938 = vmatpush1.bf16.msra.mxu1 %v937_v57  ;;  %v713_v50 = vpop.permute.xlu0 %712 }
 0x29a   : > { %v715_v28 = vpop.permute.xlu1 %714 }
 0x29b   : > { %v716_v63 = vsel %vm503_vm7, %v713_v50, %v715_v28  ;;  %v717_v0 = vsel %vm503_vm7, %v715_v28, %v713_v50 }
 0x29c   : > { %v718_v54 = vmul.f32 %v716_v63, %v1200_v27  ;;  %v719_v58 = vmul.f32 %v717_v0, %v1203_v29 }
 0x29d   : > { %v723_v59 = vpop.permute.xlu0 %722 }
 0x29e   : > { %v725_v60 = vpop.permute.xlu1 %724  ;;  %v939_v61 = vpack.c.bf16 %v719_v58, %v709_v53  ;;  %v941_v62 = vpack.c.bf16 %v718_v54, %v708_v51 }
 0x29f   : > { %v727_v1 = vsel %vm522_vm8, %v725_v60, %v723_v59  ;;  %v726_v2 = vsel %vm522_vm8, %v723_v59, %v725_v60 }
 0x2a0   : > { %v729_v3 = vmul.f32 %v727_v1, %v1215_v37  ;;  %940 = vmatprep.subr.bf16.mxu1 %v939_v61  ;;  %v728_v22 = vmul.f32 %v726_v2, %v1222_v46 }
 0x2a1   : > { %942 = vmatpush1.bf16.msra.mxu1 %v941_v62 }
 0x2a2   : > { %769 = vmatprep.subr.mxu1 %v729_v3 }
 0x2a5   : > { %770 = vmatpush1.msra.mxu1 %v728_v22 }
 0x2a6   : > { %906 = vmatmul.mubr.msk.f32.vlgmr.msra.gmra.mrb[0].mxu1 %vm555_vm9, %v343_v25 }
 0x2ae   : > { %v827_v27 = vpop.permute.xlu0 %826 }
 0x379   : > { %v819_v29 = vpop.f32.mrb[0].mxu1 }
 0x37a   : > { %v829_v4 = vadd.f32 %v827_v27, %v819_v29  ;;  %v821_v37 = vpop.f32.mrb[1].mxu1 }
 0x37b   : > { %v830_v5 = vadd.f32 %v827_v27, %v821_v37 }
 0x37c   : > { %v834_v6 = vadd.f32 %v829_v4, %v1059_v12 }
 0x37d   : > { %v835_v7 = vadd.f32 %v832_v26, %v830_v5 }
 0x37f   : > { %v838_v46 = vcombine.low %v834_v6, %v835_v7 }
 0x381   : > { %840 = vst [vmem:[%s332_s25] sm:$0xff] %v838_v46 }
 0x382 PF: > { %s19_s30 = sadd.s32 1, %s971_s30  }
 0x383   : > { %p16_p4 = scmp.ge.s32.totalorder %s19_s30, 4  }
 0x385   :  { %18 = sbr.rel (!%p16_p4) target bundleno = 1 (0x1), region = 86 }

</bundles_post_ra>
